<compile_context>
chip_gen: v5e
topology: v5e:2x2
jax: 0.10.0
libtpu: 0.0.40
codegen_flags: <defaults>
</compile_context>

<pallas_src>
import math
import functools

import jax
import jax.numpy as jnp
from jax import lax
from jax.experimental import pallas as pl
from jax.experimental.pallas import tpu as pltpu


def _layernorm(x, gamma, beta, eps=1e-5):
    mu = jnp.mean(x, axis=-1, keepdims=True)
    var = jnp.mean((x - mu) ** 2, axis=-1, keepdims=True)
    return (x - mu) * lax.rsqrt(var + eps) * gamma + beta


def _attend_kernel(
    hq_ref, hkv_ref,
    wk_ref, bk_ref, wv_ref, bv_ref, wo_ref, bo_ref, gamma_ref, beta_ref,
    att_ref, probs_ref, scores_ref,
    *, inv_sqrt_dk,
):
    hq = hq_ref[0]            # (TQ,  d)
    hkv = hkv_ref[0]          # (Nkv, d)
    wk = wk_ref[...]          # (d, d_k)
    bk = bk_ref[...]          # (1, d_k)
    wv = wv_ref[...]          # (d, d_v)
    bv = bv_ref[...]          # (1, d_v)
    wo = wo_ref[...]          # (d_v, d)
    bo = bo_ref[...]          # (1, d)
    gamma = gamma_ref[...]    # (1, d)
    beta = beta_ref[...]      # (1, d)

    # shared key / value projections (symmetric=True).  The 1/sqrt(d_k) scale is applied
    # to the narrow (TQ, d_k) tile instead of the wide (TQ, Nkv) score matrix.
    keys_q = (jnp.dot(hq, wk, preferred_element_type=jnp.float32) + bk) * inv_sqrt_dk
    keys_kv = jnp.dot(hkv, wk, preferred_element_type=jnp.float32) + bk
    vals_kv = jnp.dot(hkv, wv, preferred_element_type=jnp.float32) + bv

    # scaled dot-product similarity: contract last dims directly on the MXU (no .T).
    s = lax.dot_general(keys_q, keys_kv, (((1,), (1,)), ((), ())),
                        preferred_element_type=jnp.float32)        # (TQ, Nkv)
    scores_ref[0] = s

    # softmax over the last axis (no mask, no attention dropout).  EUP approx reciprocal
    # + one Newton step keeps f32-level accuracy without a VALU divide sequence.
    m = jnp.max(s, axis=-1, keepdims=True)
    e = jnp.exp(s - m)
    denom = jnp.sum(e, axis=-1, keepdims=True)
    r = pl.reciprocal(denom, approx=True)
    r = r * (2.0 - denom * r)
    p = e * r
    probs_ref[0] = p

    # attend, output-project, layer-norm
    att = jnp.dot(p, vals_kv, preferred_element_type=jnp.float32)   # (TQ, d_v)
    att = jnp.dot(att, wo, preferred_element_type=jnp.float32) + bo
    att_ref[0] = _layernorm(att, gamma, beta)


def _step_vmem_bytes(tq, n_kv, d):
    """Rough per-grid-step VMEM estimate (double-buffered blocks + f32 temporaries)."""
    f32 = 4
    pipeline = 2 * (tq * d + n_kv * d + tq * d + 2 * tq * n_kv)   # double-buffered in/out blocks
    temps = 4 * tq * n_kv + 2 * n_kv * d + 3 * tq * d             # keys/vals/scores/exp/probs/att
    return f32 * (pipeline + temps)


def _choose_tile_q(n_q, n_kv, d, budget_bytes=20 << 20):
    """Largest query-row tile (multiple of 8, dividing n_q) that fits the VMEM budget."""
    if (n_q <= 512 or n_q % 8 != 0) and _step_vmem_bytes(n_q, n_kv, d) <= budget_bytes:
        return n_q
    for t in (512, 256, 128, 64, 32, 16, 8):
        if n_q % t == 0 and _step_vmem_bytes(t, n_kv, d) <= budget_bytes:
            return t
    # TODO(synk): extremely large N_kv would need an online-softmax (flash-style) kernel;
    # here the full KV row must stay resident because probs/scores are themselves outputs.
    return n_q


def _attend_one_direction(hq, hkv, params):
    """Rows of `hq` attend over `hkv`.  Returns (attended, probs, scores)."""
    B, N_q, d = hq.shape
    _, N_kv, _ = hkv.shape
    d_k = params["wk"].shape[1]
    d_v = params["wv"].shape[1]

    tile_q = _choose_tile_q(N_q, N_kv, d)
    num_q_tiles = N_q // tile_q
    vmem_limit = int(min(56 << 20, max(32 << 20, 2 * _step_vmem_bytes(tile_q, N_kv, d))))

    kernel = functools.partial(_attend_kernel, inv_sqrt_dk=1.0 / math.sqrt(d_k))
    w_spec = lambda shape: pl.BlockSpec(shape, lambda b, q: (0, 0))

    out_shapes = (
        jax.ShapeDtypeStruct((B, N_q, d), jnp.float32),      # attended
        jax.ShapeDtypeStruct((B, N_q, N_kv), jnp.float32),   # probs
        jax.ShapeDtypeStruct((B, N_q, N_kv), jnp.float32),   # scores
    )

    return pl.pallas_call(
        kernel,
        out_shape=out_shapes,
        grid_spec=pltpu.PrefetchScalarGridSpec(
            num_scalar_prefetch=0,
            grid=(B, num_q_tiles),
            in_specs=[
                pl.BlockSpec((1, tile_q, d), lambda b, q: (b, q, 0)),
                pl.BlockSpec((1, N_kv, d), lambda b, q: (b, 0, 0)),
                w_spec((d, d_k)),
                w_spec((1, d_k)),
                w_spec((d, d_v)),
                w_spec((1, d_v)),
                w_spec((d_v, d)),
                w_spec((1, d)),
                w_spec((1, d)),
                w_spec((1, d)),
            ],
            out_specs=[
                pl.BlockSpec((1, tile_q, d), lambda b, q: (b, q, 0)),
                pl.BlockSpec((1, tile_q, N_kv), lambda b, q: (b, q, 0)),
                pl.BlockSpec((1, tile_q, N_kv), lambda b, q: (b, q, 0)),
            ],
        ),
        compiler_params=pltpu.CompilerParams(
            dimension_semantics=("parallel", "parallel"),
            vmem_limit_bytes=vmem_limit,
        ),
    )(
        hq, hkv,
        params["wk"], params["bk"],
        params["wv"], params["bv"],
        params["wo"], params["bo"],
        params["gamma"], params["beta"],
    )


def cross_attention(hidden_a, hidden_b, params):
    """CrossAttention.forward with default options (symmetric, scaled_dot_product,
    layer norm, dropout=0, temperature=1, no masks)."""
    att_b2a, p_b2a, s_b2a = _attend_one_direction(hidden_a, hidden_b, params)
    att_a2b, p_a2b, s_a2b = _attend_one_direction(hidden_b, hidden_a, params)
    return att_b2a, att_a2b, p_b2a, p_a2b, s_b2a, s_a2b


def init_params(key, d, d_k=None, d_v=None):
    """Deterministic init mirroring the PyTorch module:
    kaiming_normal_(mode='fan_out', nonlinearity='linear') -> std = 1/sqrt(out_features),
    zero biases, LayerNorm gamma=1 / beta=0.  Weights stored (in, out) so kernel does x @ W."""
    if d_k is None:
        d_k = d
    if d_v is None:
        d_v = d
    k1, k2, k3 = jax.random.split(key, 3)
    return {
        "wk": jax.random.normal(k1, (d, d_k), jnp.float32) * (1.0 / math.sqrt(d_k)),
        "bk": jnp.zeros((1, d_k), jnp.float32),
        "wv": jax.random.normal(k2, (d, d_v), jnp.float32) * (1.0 / math.sqrt(d_v)),
        "bv": jnp.zeros((1, d_v), jnp.float32),
        "wo": jax.random.normal(k3, (d_v, d), jnp.float32) * (1.0 / math.sqrt(d)),
        "bo": jnp.zeros((1, d), jnp.float32),
        "gamma": jnp.ones((1, d), jnp.float32),
        "beta": jnp.zeros((1, d), jnp.float32),
    }


def cross_attention_reference(hidden_a, hidden_b, params):
    """Plain-JAX reference replicating CrossAttention.forward (defaults)."""
    d_k = params["wk"].shape[1]
    keys_a = hidden_a @ params["wk"] + params["bk"]
    keys_b = hidden_b @ params["wk"] + params["bk"]
    vals_a = hidden_a @ params["wv"] + params["bv"]
    vals_b = hidden_b @ params["wv"] + params["bv"]
    s_b2a = (keys_a @ jnp.swapaxes(keys_b, -1, -2)) / math.sqrt(d_k)
    s_a2b = jnp.swapaxes(s_b2a, -1, -2)

    def apply_attn(scores, values):
        probs = jax.nn.softmax(scores, axis=-1)
        att = probs @ values
        att = att @ params["wo"] + params["bo"]
        mu = jnp.mean(att, -1, keepdims=True)
        var = jnp.mean((att - mu) ** 2, -1, keepdims=True)
        att = (att - mu) / jnp.sqrt(var + 1e-5) * params["gamma"] + params["beta"]
        return att, probs

    att_b2a, p_b2a = apply_attn(s_b2a, vals_b)
    att_a2b, p_a2b = apply_attn(s_a2b, vals_a)
    return att_b2a, att_a2b, p_b2a, p_a2b, s_b2a, s_a2b


if __name__ == "__main__":
    B, N_a, N_b, d = 2, 8, 16, 32

    key = jax.random.PRNGKey(0)
    k_a, k_b, k_p = jax.random.split(key, 3)
    hidden_a = jax.random.normal(k_a, (B, N_a, d), jnp.float32)
    hidden_b = jax.random.normal(k_b, (B, N_b, d), jnp.float32)
    params = init_params(k_p, d)

    outs = cross_attention(hidden_a, hidden_b, params)
    outs = jax.block_until_ready(outs)

    refs = cross_attention_reference(hidden_a, hidden_b, params)
    for o, r in zip(outs, refs):
        assert o.shape == r.shape, (o.shape, r.shape)
        assert jnp.allclose(o, r, atol=1e-4, rtol=1e-4), float(jnp.max(jnp.abs(o - r)))

    print("KERNEL_OK")
</pallas_src>

<mosaic_0001>
module attributes {stable_mosaic.version = 11 : i64} {
  func.func @_attend_kernel(%arg0: i32, %arg1: i32, %arg2: memref<1x8x32xf32, #tpu.memory_space<vmem>>, %arg3: memref<1x16x32xf32, #tpu.memory_space<vmem>>, %arg4: memref<32x32xf32, #tpu.memory_space<vmem>>, %arg5: memref<1x32xf32, #tpu.memory_space<vmem>>, %arg6: memref<32x32xf32, #tpu.memory_space<vmem>>, %arg7: memref<1x32xf32, #tpu.memory_space<vmem>>, %arg8: memref<32x32xf32, #tpu.memory_space<vmem>>, %arg9: memref<1x32xf32, #tpu.memory_space<vmem>>, %arg10: memref<1x32xf32, #tpu.memory_space<vmem>>, %arg11: memref<1x32xf32, #tpu.memory_space<vmem>>, %arg12: memref<1x8x32xf32, #tpu.memory_space<vmem>>, %arg13: memref<1x8x16xf32, #tpu.memory_space<vmem>>, %arg14: memref<1x8x16xf32, #tpu.memory_space<vmem>>) attributes {dimension_semantics = [#tpu.dimension_semantics<parallel>, #tpu.dimension_semantics<parallel>], iteration_bounds = array<i64: 2, 1>, scalar_prefetch = 0 : i64, scratch_operands = 0 : i64, tpu.core_type = #tpu.core_type<tc>, window_params = [{transform_indices = @transform_0, window_bounds = array<i64: 1, 8, 32>}, {transform_indices = @transform_1, window_bounds = array<i64: 1, 16, 32>}, {pipeline_mode = #tpu.pipeline_mode<synchronous>, transform_indices = @transform_2, window_bounds = array<i64: 32, 32>}, {pipeline_mode = #tpu.pipeline_mode<synchronous>, transform_indices = @transform_3, window_bounds = array<i64: 1, 32>}, {pipeline_mode = #tpu.pipeline_mode<synchronous>, transform_indices = @transform_4, window_bounds = array<i64: 32, 32>}, {pipeline_mode = #tpu.pipeline_mode<synchronous>, transform_indices = @transform_5, window_bounds = array<i64: 1, 32>}, {pipeline_mode = #tpu.pipeline_mode<synchronous>, transform_indices = @transform_6, window_bounds = array<i64: 32, 32>}, {pipeline_mode = #tpu.pipeline_mode<synchronous>, transform_indices = @transform_7, window_bounds = array<i64: 1, 32>}, {pipeline_mode = #tpu.pipeline_mode<synchronous>, transform_indices = @transform_8, window_bounds = array<i64: 1, 32>}, {pipeline_mode = #tpu.pipeline_mode<synchronous>, transform_indices = @transform_9, window_bounds = array<i64: 1, 32>}, {transform_indices = @transform_10, window_bounds = array<i64: 1, 8, 32>}, {transform_indices = @transform_11, window_bounds = array<i64: 1, 8, 16>}, {transform_indices = @transform_12, window_bounds = array<i64: 1, 8, 16>}]} {
    %c0 = arith.constant 0 : index
    %c0_0 = arith.constant 0 : index
    %c0_1 = arith.constant 0 : index
    %0 = vector.load %arg2[%c0, %c0_0, %c0_1] : memref<1x8x32xf32, #tpu.memory_space<vmem>>, vector<1x8x32xf32>
    %1 = vector.shape_cast %0 : vector<1x8x32xf32> to vector<8x32xf32>
    %c0_2 = arith.constant 0 : index
    %c0_3 = arith.constant 0 : index
    %c0_4 = arith.constant 0 : index
    %2 = vector.load %arg3[%c0_2, %c0_3, %c0_4] : memref<1x16x32xf32, #tpu.memory_space<vmem>>, vector<1x16x32xf32>
    %3 = vector.shape_cast %2 : vector<1x16x32xf32> to vector<16x32xf32>
    %c0_5 = arith.constant 0 : index
    %c0_6 = arith.constant 0 : index
    %4 = vector.load %arg4[%c0_5, %c0_6] : memref<32x32xf32, #tpu.memory_space<vmem>>, vector<32x32xf32>
    %c0_7 = arith.constant 0 : index
    %c0_8 = arith.constant 0 : index
    %5 = vector.load %arg5[%c0_7, %c0_8] : memref<1x32xf32, #tpu.memory_space<vmem>>, vector<1x32xf32>
    %c0_9 = arith.constant 0 : index
    %c0_10 = arith.constant 0 : index
    %6 = vector.load %arg6[%c0_9, %c0_10] : memref<32x32xf32, #tpu.memory_space<vmem>>, vector<32x32xf32>
    %c0_11 = arith.constant 0 : index
    %c0_12 = arith.constant 0 : index
    %7 = vector.load %arg7[%c0_11, %c0_12] : memref<1x32xf32, #tpu.memory_space<vmem>>, vector<1x32xf32>
    %c0_13 = arith.constant 0 : index
    %c0_14 = arith.constant 0 : index
    %8 = vector.load %arg8[%c0_13, %c0_14] : memref<32x32xf32, #tpu.memory_space<vmem>>, vector<32x32xf32>
    %c0_15 = arith.constant 0 : index
    %c0_16 = arith.constant 0 : index
    %9 = vector.load %arg9[%c0_15, %c0_16] : memref<1x32xf32, #tpu.memory_space<vmem>>, vector<1x32xf32>
    %c0_17 = arith.constant 0 : index
    %c0_18 = arith.constant 0 : index
    %10 = vector.load %arg10[%c0_17, %c0_18] : memref<1x32xf32, #tpu.memory_space<vmem>>, vector<1x32xf32>
    %c0_19 = arith.constant 0 : index
    %c0_20 = arith.constant 0 : index
    %11 = vector.load %arg11[%c0_19, %c0_20] : memref<1x32xf32, #tpu.memory_space<vmem>>, vector<1x32xf32>
    %cst = arith.constant dense<0.000000e+00> : vector<8x32xf32>
    %12 = tpu.matmul %1, %4, %cst {dimension_numbers = #tpu.dot_dimension_numbers<[1], [0], [0], [1], [0, 0, 1, 1], [], []>} : vector<8x32xf32>, vector<32x32xf32>, vector<8x32xf32> -> vector<8x32xf32>
    %13 = vector.broadcast %5 : vector<1x32xf32> to vector<8x32xf32>
    %14 = arith.addf %12, %13 : vector<8x32xf32>
    %cst_21 = arith.constant 0.176776692 : f32
    %15 = vector.broadcast %cst_21 : f32 to vector<8x32xf32>
    %16 = arith.mulf %14, %15 : vector<8x32xf32>
    %cst_22 = arith.constant dense<0.000000e+00> : vector<16x32xf32>
    %17 = tpu.matmul %3, %4, %cst_22 {dimension_numbers = #tpu.dot_dimension_numbers<[1], [0], [0], [1], [0, 0, 1, 1], [], []>} : vector<16x32xf32>, vector<32x32xf32>, vector<16x32xf32> -> vector<16x32xf32>
    %18 = vector.broadcast %5 : vector<1x32xf32> to vector<16x32xf32>
    %19 = arith.addf %17, %18 : vector<16x32xf32>
    %cst_23 = arith.constant dense<0.000000e+00> : vector<16x32xf32>
    %20 = tpu.matmul %3, %6, %cst_23 {dimension_numbers = #tpu.dot_dimension_numbers<[1], [0], [0], [1], [0, 0, 1, 1], [], []>} : vector<16x32xf32>, vector<32x32xf32>, vector<16x32xf32> -> vector<16x32xf32>
    %21 = vector.broadcast %7 : vector<1x32xf32> to vector<16x32xf32>
    %22 = arith.addf %20, %21 : vector<16x32xf32>
    %cst_24 = arith.constant dense<0.000000e+00> : vector<8x16xf32>
    %23 = tpu.matmul %16, %19, %cst_24 {dimension_numbers = #tpu.dot_dimension_numbers<[1], [1], [0], [0], [0, 0, 1, 0], [], []>} : vector<8x32xf32>, vector<16x32xf32>, vector<8x16xf32> -> vector<8x16xf32>
    %c0_25 = arith.constant 0 : index
    %c0_26 = arith.constant 0 : index
    %c0_27 = arith.constant 0 : index
    %24 = vector.load %arg14[%c0_25, %c0_26, %c0_27] : memref<1x8x16xf32, #tpu.memory_space<vmem>>, vector<1x8x16xf32>
    %25 = vector.shape_cast %24 : vector<1x8x16xf32> to vector<8x16xf32>
    %26 = vector.shape_cast %23 : vector<8x16xf32> to vector<1x8x16xf32>
    tpu.vector_store %arg14[%c0_25, %c0_26, %c0_27], %26 {strides = array<i32>} : memref<1x8x16xf32, #tpu.memory_space<vmem>>, vector<1x8x16xf32>,
    %cst_28 = arith.constant dense<0xFF800000> : vector<8xf32>
    %27 = vector.multi_reduction <maximumf>, %23, %cst_28 [1] : vector<8x16xf32> to vector<8xf32>
    %28 = vector.shape_cast %27 : vector<8xf32> to vector<8x1xf32>
    %29 = vector.broadcast %28 : vector<8x1xf32> to vector<8x16xf32>
    %30 = arith.subf %23, %29 : vector<8x16xf32>
    %31 = math.exp %30 : vector<8x16xf32>
    %cst_29 = arith.constant dense<0.000000e+00> : vector<8xf32>
    %32 = vector.multi_reduction <add>, %31, %cst_29 [1] : vector<8x16xf32> to vector<8xf32>
    %33 = vector.shape_cast %32 : vector<8xf32> to vector<8x1xf32>
    %34 = tpu.reciprocal %33 {approx = true} : vector<8x1xf32> -> vector<8x1xf32>
    %35 = arith.mulf %33, %34 : vector<8x1xf32>
    %cst_30 = arith.constant 2.000000e+00 : f32
    %36 = vector.broadcast %cst_30 : f32 to vector<8x1xf32>
    %37 = arith.subf %36, %35 : vector<8x1xf32>
    %38 = arith.mulf %34, %37 : vector<8x1xf32>
    %39 = vector.broadcast %38 : vector<8x1xf32> to vector<8x16xf32>
    %40 = arith.mulf %31, %39 : vector<8x16xf32>
    %c0_31 = arith.constant 0 : index
    %c0_32 = arith.constant 0 : index
    %c0_33 = arith.constant 0 : index
    %41 = vector.load %arg13[%c0_31, %c0_32, %c0_33] : memref<1x8x16xf32, #tpu.memory_space<vmem>>, vector<1x8x16xf32>
    %42 = vector.shape_cast %41 : vector<1x8x16xf32> to vector<8x16xf32>
    %43 = vector.shape_cast %40 : vector<8x16xf32> to vector<1x8x16xf32>
    tpu.vector_store %arg13[%c0_31, %c0_32, %c0_33], %43 {strides = array<i32>} : memref<1x8x16xf32, #tpu.memory_space<vmem>>, vector<1x8x16xf32>,
    %cst_34 = arith.constant dense<0.000000e+00> : vector<8x32xf32>
    %44 = tpu.matmul %40, %22, %cst_34 {dimension_numbers = #tpu.dot_dimension_numbers<[1], [0], [0], [1], [0, 0, 1, 1], [], []>} : vector<8x16xf32>, vector<16x32xf32>, vector<8x32xf32> -> vector<8x32xf32>
    %cst_35 = arith.constant dense<0.000000e+00> : vector<8x32xf32>
    %45 = tpu.matmul %44, %8, %cst_35 {dimension_numbers = #tpu.dot_dimension_numbers<[1], [0], [0], [1], [0, 0, 1, 1], [], []>} : vector<8x32xf32>, vector<32x32xf32>, vector<8x32xf32> -> vector<8x32xf32>
    %46 = vector.broadcast %9 : vector<1x32xf32> to vector<8x32xf32>
    %47 = arith.addf %45, %46 : vector<8x32xf32>
    %cst_36 = arith.constant dense<0.000000e+00> : vector<8xf32>
    %48 = vector.multi_reduction <add>, %47, %cst_36 [1] : vector<8x32xf32> to vector<8xf32>
    %49 = vector.shape_cast %48 : vector<8xf32> to vector<8x1xf32>
    %cst_37 = arith.constant 3.200000e+01 : f32
    %50 = vector.broadcast %cst_37 : f32 to vector<8x1xf32>
    %51 = arith.divf %49, %50 : vector<8x1xf32>
    %52 = vector.broadcast %51 : vector<8x1xf32> to vector<8x32xf32>
    %53 = arith.subf %47, %52 : vector<8x32xf32>
    %54 = arith.mulf %53, %53 : vector<8x32xf32>
    %cst_38 = arith.constant dense<0.000000e+00> : vector<8xf32>
    %55 = vector.multi_reduction <add>, %54, %cst_38 [1] : vector<8x32xf32> to vector<8xf32>
    %56 = vector.shape_cast %55 : vector<8xf32> to vector<8x1xf32>
    %cst_39 = arith.constant 3.200000e+01 : f32
    %57 = vector.broadcast %cst_39 : f32 to vector<8x1xf32>
    %58 = arith.divf %56, %57 : vector<8x1xf32>
    %59 = vector.broadcast %51 : vector<8x1xf32> to vector<8x32xf32>
    %60 = arith.subf %47, %59 : vector<8x32xf32>
    %cst_40 = arith.constant 9.99999974E-6 : f32
    %61 = vector.broadcast %cst_40 : f32 to vector<8x1xf32>
    %62 = arith.addf %58, %61 : vector<8x1xf32>
    %63 = math.rsqrt %62 : vector<8x1xf32>
    %64 = vector.broadcast %63 : vector<8x1xf32> to vector<8x32xf32>
    %65 = arith.mulf %60, %64 : vector<8x32xf32>
    %66 = vector.broadcast %10 : vector<1x32xf32> to vector<8x32xf32>
    %67 = arith.mulf %65, %66 : vector<8x32xf32>
    %68 = vector.broadcast %11 : vector<1x32xf32> to vector<8x32xf32>
    %69 = arith.addf %67, %68 : vector<8x32xf32>
    %c0_41 = arith.constant 0 : index
    %c0_42 = arith.constant 0 : index
    %c0_43 = arith.constant 0 : index
    %70 = vector.load %arg12[%c0_41, %c0_42, %c0_43] : memref<1x8x32xf32, #tpu.memory_space<vmem>>, vector<1x8x32xf32>
    %71 = vector.shape_cast %70 : vector<1x8x32xf32> to vector<8x32xf32>
    %72 = vector.shape_cast %69 : vector<8x32xf32> to vector<1x8x32xf32>
    tpu.vector_store %arg12[%c0_41, %c0_42, %c0_43], %72 {strides = array<i32>} : memref<1x8x32xf32, #tpu.memory_space<vmem>>, vector<1x8x32xf32>,
    return
  }
  func.func @transform_0(%arg0: i32, %arg1: i32) -> (i32, i32, i32) {
    %c0_i32 = arith.constant 0 : i32
    %c0_i32_0 = arith.constant 0 : i32
    return %arg0, %arg1, %c0_i32 : i32, i32, i32
  }
  func.func @transform_1(%arg0: i32, %arg1: i32) -> (i32, i32, i32) {
    %c0_i32 = arith.constant 0 : i32
    %c0_i32_0 = arith.constant 0 : i32
    %c0_i32_1 = arith.constant 0 : i32
    return %arg0, %c0_i32, %c0_i32_0 : i32, i32, i32
  }
  func.func @transform_2(%arg0: i32, %arg1: i32) -> (i32, i32) {
    %c0_i32 = arith.constant 0 : i32
    %c0_i32_0 = arith.constant 0 : i32
    %c0_i32_1 = arith.constant 0 : i32
    return %c0_i32, %c0_i32_0 : i32, i32
  }
  func.func @transform_3(%arg0: i32, %arg1: i32) -> (i32, i32) {
    %c0_i32 = arith.constant 0 : i32
    %c0_i32_0 = arith.constant 0 : i32
    %c0_i32_1 = arith.constant 0 : i32
    return %c0_i32, %c0_i32_0 : i32, i32
  }
  func.func @transform_4(%arg0: i32, %arg1: i32) -> (i32, i32) {
    %c0_i32 = arith.constant 0 : i32
    %c0_i32_0 = arith.constant 0 : i32
    %c0_i32_1 = arith.constant 0 : i32
    return %c0_i32, %c0_i32_0 : i32, i32
  }
  func.func @transform_5(%arg0: i32, %arg1: i32) -> (i32, i32) {
    %c0_i32 = arith.constant 0 : i32
    %c0_i32_0 = arith.constant 0 : i32
    %c0_i32_1 = arith.constant 0 : i32
    return %c0_i32, %c0_i32_0 : i32, i32
  }
  func.func @transform_6(%arg0: i32, %arg1: i32) -> (i32, i32) {
    %c0_i32 = arith.constant 0 : i32
    %c0_i32_0 = arith.constant 0 : i32
    %c0_i32_1 = arith.constant 0 : i32
    return %c0_i32, %c0_i32_0 : i32, i32
  }
  func.func @transform_7(%arg0: i32, %arg1: i32) -> (i32, i32) {
    %c0_i32 = arith.constant 0 : i32
    %c0_i32_0 = arith.constant 0 : i32
    %c0_i32_1 = arith.constant 0 : i32
    return %c0_i32, %c0_i32_0 : i32, i32
  }
  func.func @transform_8(%arg0: i32, %arg1: i32) -> (i32, i32) {
    %c0_i32 = arith.constant 0 : i32
    %c0_i32_0 = arith.constant 0 : i32
    %c0_i32_1 = arith.constant 0 : i32
    return %c0_i32, %c0_i32_0 : i32, i32
  }
  func.func @transform_9(%arg0: i32, %arg1: i32) -> (i32, i32) {
    %c0_i32 = arith.constant 0 : i32
    %c0_i32_0 = arith.constant 0 : i32
    %c0_i32_1 = arith.constant 0 : i32
    return %c0_i32, %c0_i32_0 : i32, i32
  }
  func.func @transform_10(%arg0: i32, %arg1: i32) -> (i32, i32, i32) {
    %c0_i32 = arith.constant 0 : i32
    %c0_i32_0 = arith.constant 0 : i32
    return %arg0, %arg1, %c0_i32 : i32, i32, i32
  }
  func.func @transform_11(%arg0: i32, %arg1: i32) -> (i32, i32, i32) {
    %c0_i32 = arith.constant 0 : i32
    %c0_i32_0 = arith.constant 0 : i32
    return %arg0, %arg1, %c0_i32 : i32, i32, i32
  }
  func.func @transform_12(%arg0: i32, %arg1: i32) -> (i32, i32, i32) {
    %c0_i32 = arith.constant 0 : i32
    %c0_i32_0 = arith.constant 0 : i32
    return %arg0, %arg1, %c0_i32 : i32, i32, i32
  }
}

</mosaic_0001>

<bundles_post_ra>
// kernel: tpu_custom_call.1
= control target key start
LH: loop header
LB: loop body
LE: loop exit
PB: predicated region body
PF: predicated region fallthrough
CT: control target
= control target key end

     0   :  { %s1862_s0 = inlined_call_operand.hbm [shape: f32[2,8,32], index: 0, kind: input, shape index: {}]   ;;  %s1863_s1 = inlined_call_operand.hbm [shape: f32[2,16,32], index: 1, kind: input, shape index: {}]   ;;  %s1864_s2 = inlined_call_operand.hbm [shape: f32[32,32], index: 2, kind: input, shape index: {}]   ;;  %s1865_s3 = inlined_call_operand.vmem [shape: f32[1,32], index: 3, kind: input, shape index: {}]   ;;  %s1866_s4 = inlined_call_operand.hbm [shape: f32[32,32], index: 4, kind: input, shape index: {}]   ;;  %s1867_s5 = inlined_call_operand.vmem [shape: f32[1,32], index: 5, kind: input, shape index: {}]   ;;  %s1868_s6 = inlined_call_operand.hbm [shape: f32[32,32], index: 6, kind: input, shape index: {}]   ;;  %s1869_s7 = inlined_call_operand.vmem [shape: f32[1,32], index: 7, kind: input, shape index: {}]   ;;  %s1870_s8 = inlined_call_operand.vmem [shape: f32[1,32], index: 8, kind: input, shape index: {}]   ;;  %s1871_s9 = inlined_call_operand.vmem [shape: f32[1,32], index: 9, kind: input, shape index: {}]   ;;  %s1872_s10 = inlined_call_operand.hbm [shape: f32[2,8,32], index: 10, kind: output, shape index: {0}]   ;;  %s1873_s11 = inlined_call_operand.hbm [shape: f32[2,8,16], index: 11, kind: output, shape index: {1}]   ;;  %s1874_s12 = inlined_call_operand.hbm [shape: f32[2,8,16], index: 12, kind: output, shape index: {2}]  }
   0x1   :  { %1885 = sst [smem:[#allocation26_spill]] %s1864_s2 }
   0x2   :  { %1886 = sst [smem:[#allocation27_spill]] %s1866_s4 }
   0x3   :  { %1887 = sst [smem:[#allocation28_spill]] %s1868_s6 }
   0x4   :  { %1888 = sst [smem:[#allocation29_spill]] %s1870_s8 }
   0x5   :  { %1889 = sst [smem:[#allocation30_spill]] %s1871_s9 }
   0x6   :  { %1890 = sst [smem:[#allocation31_spill]] %s1872_s10 }
   0x7   :  { %1891 = sst [smem:[#allocation32_spill]] %s1873_s11 }
   0x8   :  { %1892 = sst [smem:[#allocation33_spill]] %s1874_s12 }
   0x9   :  { %18 = vsyncpa [#allocation3], 0 }
   0xa   :  { %20 = vsyncpa [#allocation3 + $0x1], 0 }
   0xb   :  { %21 = vsyncpa [#allocation6], 0 }
   0xc   :  { %23 = vsyncpa [#allocation6 + $0x1], 0 }
   0xd   :  { %24 = vsyncpa [#allocation9], 0 }
   0xe   :  { %25 = vsyncpa [#allocation4], 0 }
   0xf   :  { %27 = vsyncpa [#allocation4 + $0x1], 0 }
  0x10   :  { %28 = vsyncpa [#allocation13], 0 }
  0x11   :  { %30 = vsyncpa [#allocation13 + $0x1], 0  ;;  %s1591_s21 = smov 0   ;;  %s1593_s22 = smov 0  }
  0x12   :  { %s1595_s23 = smov 0   ;;  %s1597_s24 = smov 0  }
  0x13   :  { %s1599_s25 = smov 0   ;;  %s1601_s26 = smov 0  }
  0x14 LB: > { %1893 = sst [smem:[#allocation21_spill]] %s1498_s21  ;;  %s1622_s27 = sadd.s32 4294967295, %s1518_s26   ;;  %s1518_s26 = sphi %s1601_s26, %s36_s26   ;;  %s1514_s25 = sphi %s1599_s25, %s1923_s25   ;;  %s1510_s24 = sphi %s1597_s24, %s1922_s24   ;;  %s1506_s23 = sphi %s1595_s23, %s1918_s23   ;;  %s1502_s22 = sphi %s1593_s22, %s1921_s22   ;;  %s1498_s21 = sphi %s1591_s21, %s1920_s21  }
  0x15   : > { %1894 = sst [smem:[#allocation22_spill]] %s1506_s23  ;;  %p1052_p0 = scmp.ge.s32.totalorder %s1518_s26, 1 }
  0x16   : > { %p71_p1 = scmp.eq.s32.totalorder %s1622_s27, 0  ;;  %p359_p2 = scmp.lt.s32.totalorder %s1518_s26, 3 }
  0x17   : > { %s1895_s2 = sld [smem:[#allocation26_spill]]  ;;  %s1520_s14 = smov [#allocation7]  }
  0x18   : > { %p1630_p3 = pnand %p1052_p0, %p359_p2  ;;  %s372_s15 = sshll.u32 %s1520_s14, 4  ;;  %s373_s15 = int_to_ptr.vmem [resolvable:$true] %s372_s15 }
  0x19   : > { %p1056_p6 = scmp.ge.s32.totalorder %s1518_s26, 2  ;;  %s1898_s4 = sld [smem:[#allocation27_spill]] }
  0x1a   : > { %p1112_p4 = pneg %p1630_p3  ;;  %s1875_s20 = smov 128  }
  0x1b   : > { %s1876_s28 = smov 8   ;;  %s1523_s29 = smov [#allocation8]  }
  0x1c   : > { %p1638_p5 = pnand %p1112_p4, %p71_p1  ;;  %s389_s14 = sshll.u32 %s1523_s29, 4  ;;  %s390_s14 = int_to_ptr.vmem [resolvable:$true] %s389_s14 }
  0x1d   : > { %s370_s30 = sshll.u32 %s1895_s2, 4  ;;  %s1899_s6 = sld [smem:[#allocation28_spill]]  ;;  %s371_s30 = int_to_ptr.hbm [resolvable:$true] %s370_s30 }
  0x1e   : > { %1115 = dma.hbm_to_vmem [thread:$0]  (!%p1638_p5), %s371_s30, 512, %s373_s15, [#allocation6], %s1875_s20, %s1875_s20, %s1876_s28  }
  0x1f   : > { %s387_s19 = sshll.u32 %s1898_s4, 4  ;;  %s1524_s30 = smov [#allocation10]   ;;  %s388_s19 = int_to_ptr.hbm [resolvable:$true] %s387_s19 }
  0x20   : > { %1118 = dma.hbm_to_vmem [thread:$0]  (!%p1638_p5), %s388_s19, 512, %s390_s14, [#allocation9], %s1875_s20, %s1875_s20, %s1876_s28  }
  0x21   : > { %s406_s15 = sshll.u32 %s1524_s30, 4  ;;  %s1877_s29 = sadd.s32 4294967294, %s1518_s26   ;;  %s407_s15 = int_to_ptr.vmem [resolvable:$true] %s406_s15 }
  0x22   : > { %s48_s17 = sadd.s32 1, %s1514_s25  ;;  %s57_s18 = sadd.s32 1, %s1506_s23 }
  0x23   : > { %s404_s2 = sshll.u32 %s1899_s6, 4  ;;  %p50_p7 = scmp.ge.s32.totalorder %s48_s17, 2  ;;  %s405_s2 = int_to_ptr.hbm [resolvable:$true] %s404_s2 }
  0x24   : > { %1121 = dma.hbm_to_vmem [thread:$0]  (!%p1638_p5), %s405_s2, 512, %s407_s15, [#allocation9], %s1875_s20, %s1875_s20, %s1876_s28  }
  0x25   : > { %p64_p8 = scmp.ne.s32.totalorder %s1506_s23, %s1502_s22  ;;  %p65_p9 = scmp.eq.s32.totalorder %s1518_s26, 0 }
  0x26   : > { %p70_p10 = scmp.ne.s32.totalorder %s1502_s22, %s1498_s21  ;;  %s1925_s17 = smov (%p50_p7, %s48_s17), 0 }
  0x27   : > { %1900 = sst [smem:[#allocation23_spill]] %s1925_s17  ;;  %p1674_p11 = por %p65_p9, %p64_p8 }
  0x28   : > { %p1680_p12 = por %p71_p1, %p70_p10  ;;  %s52_s19 = ssub.s32 %s1514_s25, %s1925_s17 }
  0x29   : > { %p290_p13 = scmp.eq.s32.totalorder %s1622_s27, 1  ;;  %p55_p0 = scmp.eq.s32.totalorder %s52_s19, 0 }
  0x2a   : > { %p296_p2 = scmp.eq.s32.totalorder %s1877_s29, 1  ;;  %p1142_p5 = scmp.lt.s32.totalorder %s1518_s26, 2 }
  0x2b   : > { %p1689_p4 = por %p290_p13, %p64_p8  ;;  %s429_s20 = sand.u32 1, %s1506_s23  }
  0x2c   : > { %s1695_s30 = scalar_select %p55_p0, %s1506_s23, %s57_s18  }
  0x2d   : > { %p1697_p7 = por %p296_p2, %p70_p10  ;;  %s1057_s28 = sshll.u32 %s429_s20, 3 }
  0x2e   : > { %1904 = sst [smem:[#allocation24_spill]] %s1695_s30  ;;  %s1058_s4 = sshll.u32 %s1514_s25, 3 }
  0x2f   : > { %s1905_s15 = scalar_select %p1697_p7, 1, 0 }
  0x30   : > { %s438_s29 = scalar_lea.hbm %s1862_s0, %s1058_s4  ;;  %s433_s17 = scalar_lea.vmem [#allocation2], %s1057_s28 }
  0x31   : > { %1906 = sst [smem:[#allocation25_spill]] %s1905_s15  ;;  %s442_s21 = sshll.u32 %s433_s17, 4  ;;  %s443_s21 = int_to_ptr.vmem [resolvable:$true] %s442_s21 }
  0x32   : > { %s440_s9 = sshll.u32 %s438_s29, 4  ;;  %p1123_p8 = pnand %p1142_p5, %p1674_p11  ;;  %s441_s9 = int_to_ptr.hbm [resolvable:$true] %s440_s9 }
  0x33   : > { %s1059_s18 = sshll.u32 %s429_s20, 4  ;;  %s1089_s30 = sshll.u32 %s1514_s25, 4 }
  0x34   : > { %s430_s10 = scalar_lea.sflag [#allocation3], %s429_s20  ;;  %s453_s15 = scalar_lea.vmem [#allocation5], %s1059_s18 }
  0x35   : > { %1125 = dma.hbm_to_vmem [thread:$0]  (!%p1123_p8), %s441_s9, 128, %s443_s21, %s430_s10  }
  0x36   : > { %s461_s23 = sshll.u32 %s453_s15, 4  ;;  %s449_s8 = sand.u32 1, %s1518_s26   ;;  %s462_s23 = int_to_ptr.vmem [resolvable:$true] %s461_s23 }
  0x37   : > { %s458_s6 = scalar_lea.hbm %s1863_s1, %s1089_s30  ;;  %s450_s28 = scalar_lea.sflag [#allocation6], %s449_s8 }
  0x38   : > { %s459_s4 = sshll.u32 %s458_s6, 4  ;;  %s1907_s29 = smov 8   ;;  %s460_s4 = int_to_ptr.hbm [resolvable:$true] %s459_s4 }
  0x39   : > { %s1908_s17 = smov 128   ;;  %473 = sbr.rel (%p1630_p3) target bundleno = 1144 (0x478), region = 60 }
  0x3a   : > { %1128 = dma.hbm_to_vmem [thread:$0]  (!%p1123_p8), %s460_s4, 256, %s462_s23, %s450_s28, %s1908_s17, %s1908_s17, %s1907_s29  }
  0x3b   : > { %s1719_s9 = sand.u32 (!%p1630_p3), 1, %s1502_s22  }
  0x3c   : > { %s1722_s10 = sshll.u32 (!%p1630_p3), %s1719_s9, 3  ;;  %s476_s11 = scalar_lea.sflag (!%p1630_p3), [#allocation3], %s1719_s9 }
  0x3d   : > { %s479_s12 = scalar_lea.vmem (!%p1630_p3), [#allocation2], %s1722_s10 }
  0x3e   : > { %1473 = dma.done.wait (%p1680_p12), %s476_s11, 128  }
  0x3f   : > { %1475 = vsyncadd (%p1680_p12), %s476_s11, 4294967168  ;;  %s485_s8 = sand.u32 1, %s1622_s27   ;;  %s1064_s21 = sshll.u32 %s1719_s9, 4 }
  0x40   : > { %s486_s23 = scalar_lea.sflag [#allocation6], %s485_s8  ;;  %s489_s13 = scalar_lea.vmem [#allocation5], %s1064_s21 }
  0x41   : > { %1477 = dma.done.wait (%p1680_p12), %s486_s23, 256  }
  0x42   : > { %1479 = vsyncadd (%p1680_p12), %s486_s23, 4294967040 }
  0x43   : > { %1481 = dma.done.wait (%p71_p1), [#allocation6], 512  }
  0x44   : > { %1483 = vsyncadd (%p71_p1), [#allocation6], 4294966784 }
  0x45   : > { %1485 = dma.done.wait (%p71_p1), [#allocation9], 1024  }
  0x46   : > { %1487 = vsyncadd (%p71_p1), [#allocation9], 4294966272  ;;  %v567_v0 = vld [vmem:[#allocation7 + $0x18] sm:$0xff]  ;;  %v566_v1 = vld [vmem:[#allocation7 + $0x10] sm:$0xff]  ;;  %vm584_vm0 = vcmask 261120   ;;  %vm693_vm1 = vcmask 130048  }
  0x47   : > { %627 = vmatpush.msra.mxu1 %v567_v0  ;;  %600 = vmatpush.msra.mxu0 %v567_v0  ;;  %v565_v2 = vld [vmem:[#allocation7 + $0x8] sm:$0xff]  ;;  %v564_v3 = vld [vmem:[#allocation7] sm:$0xff]  ;;  %v561_v5 = vld [vmem:[%s479_s12] sm:$0xff]  ;;  %s560_s2 = scalar_lea.vmem [#allocation14], %s1722_s10  ;;  %s553_s19 = scalar_lea.vmem [#allocation12], %s1722_s10  ;;  %v1525_v46 = vmov 32.0  }
  0x48   : > { %v562_v4 = vld [vmem:[%s489_s13] sm:$0xff]  ;;  %v563_v6 = vld [vmem:[%s489_s13 + $0x8] sm:$0xff]  ;;  %s1776_s4 = sshll.u32 %s1510_s24, 3  ;;  %s1909_s17 = sld [smem:[#allocation32_spill]] }
  0x49   : > { %628 = vmatpush.msra.mxu1 %v566_v1  ;;  %601 = vmatpush.msra.mxu0 %v566_v1  ;;  %v1201_v8 = vld [vmem:[%s1865_s3] ss:$0 sm:$0xff]  ;;  %v572_v15 = vld [vmem:[#allocation8 + $0x18] sm:$0xff]  ;;  %v570_v17 = vld [vmem:[#allocation8 + $0x8] sm:$0xff]  ;;  %s836_s12 = sshll.u32 %s553_s19, 4  ;;  %s1784_s23 = scalar_lea.sflag [#allocation13], %s485_s8  ;;  %s837_s12 = int_to_ptr.vmem [resolvable:$true] %s836_s12 }
  0x4a   : > { %v571_v16 = vld [vmem:[#allocation8 + $0x10] sm:$0xff]  ;;  %653 = vmatpush.msra.mxu2 %v572_v15  ;;  %v569_v18 = vld [vmem:[#allocation8] sm:$0xff]  ;;  %v577_v31 = vld [vmem:[#allocation10 + $0x18] sm:$0xff] }
  0x4b   : > { %629 = vmatpush.msra.mxu1 %v565_v2  ;;  %602 = vmatpush.msra.mxu0 %v565_v2  ;;  %v1202_v22 = vld [vmem:[%s1867_s5] ss:$0 sm:$0xff]  ;;  %v575_v33 = vld [vmem:[#allocation10 + $0x8] sm:$0xff]  ;;  %v574_v34 = vld [vmem:[#allocation10] sm:$0xff] }
  0x4c   : > { %654 = vmatpush.msra.mxu2 %v571_v16  ;;  %v576_v32 = vld [vmem:[#allocation10 + $0x10] sm:$0xff] }
  0x4d   : > { %630 = vmatpush.msra.mxu1 %v564_v3  ;;  %603 = vmatpush.msra.mxu0 %v564_v3  ;;  %v1203_v42 = vld [vmem:[%s1869_s7] ss:$0 sm:$0xff] }
  0x4e   : > { %1072 = vmatmul.msk.f32.vlgmr.msra.gmra.mxu1 %vm584_vm0, %v562_v4  ;;  %1071 = vmatmul.msk.f32.vlgmr.msra.gmra.mxu0 %vm584_vm0, %v561_v5  ;;  %s834_s11 = scalar_lea.hbm %s1909_s17, %s1776_s4  ;;  %s1384_s30 = scalar_lea.hbm %s1909_s17, 16 }
  0x4f   : > { %655 = vmatpush.msra.mxu2 %v570_v17  ;;  %s838_s21 = sshll.u32 %s834_s11, 4  ;;  %s839_s21 = int_to_ptr.hbm [resolvable:$true] %s838_s21 }
  0x50   : > { %s1378_s13 = sshra.s32 %s839_s21, 4  ;;  %s1379_s13 = int_to_ptr.hbm [resolvable:$true] %s1378_s13 }
  0x51   : > { %656 = vmatpush.msra.mxu2 %v569_v18  ;;  %s1380_s20 = scalar_lea.hbm %s1379_s13, 8  ;;  %p1385_p10 = scmp.lt.s32.totalorder %s1379_s13, %s1909_s17 }
  0x52   : > { %1074 = vmatmul.msk.f32.vlgmr.msra.gmra.mxu2 %vm584_vm0, %v562_v4  ;;  %p1381_p1 = scmp.ne.s32.totalorder %s1379_s13, %s1380_s20  ;;  %p1386_p11 = scmp.lt.s32.totalorder %s1384_s30, %s1380_s20 }
  0x54   : > { %p1382_p3 = pnand %p1381_p1, %p1689_p4  ;;  %p1387_p12 = por %p1386_p11, %p1385_p10 }
  0x56   : > { %1073 = vmatmul.msk.f32.gmra.mxu1 %vm584_vm0, %v563_v6  ;;  %p1383_p9 = pneg %p1382_p3 }
  0x58   : > { %p1388_p13 = pnand %p1387_p12, %p1383_p9 }
  0x5a   : > { %1075 = vmatmul.msk.f32.gmra.mxu2 %vm584_vm0, %v563_v6 }
  0xcb   : > { %v632_v7 = vpop.f32.mrf.mxu1  ;;  %v605_v9 = vpop.f32.mrf.mxu0 }
  0xcc   : > { %v606_v12 = vadd.f32 %v1201_v8, %v605_v9  ;;  %v633_v13 = vadd.f32 %v1201_v8, %v632_v7 }
  0xce   : > { %v608_v14 = vmul.f32 0.17677669, %v606_v12 }
  0xd3   : > { %v635_v10 = vpop.f32.mrf.mxu1 }
  0xd4   : > { %v636_v11 = vadd.f32 %v1201_v8, %v635_v10 }
  0xd5   : > { %v658_v21 = vpop.f32.mrf.mxu2 }
  0xd6   : > { %1076 = vmatpush.xpose.msk.msra.mxu3 %vm584_vm0, %v636_v11  ;;  %v659_v26 = vadd.f32 %v1202_v22, %v658_v21 }
  0xda   : > { %1077 = vmatpush.xpose.msk.msra.mxu3 %vm584_vm0, %v633_v13 }
  0xdd   : > { %1078 = vmatmul.msk.f32.vlgmr.msra.gmra.mxu3 %vm584_vm0, %v608_v14  ;;  %v661_v24 = vpop.f32.mrf.mxu2 }
  0xde   : > { %v662_v27 = vadd.f32 %v1202_v22, %v661_v24  ;;  %751 = vmatpush.msrb.mxu3 %v577_v31 }
  0xe0   : > { %727 = vmatpush.msrb.mxu0 %v662_v27  ;;  %752 = vmatpush.msrb.mxu3 %v576_v32 }
  0xe2   : > { %728 = vmatpush.msrb.mxu0 %v659_v26  ;;  %753 = vmatpush.msrb.mxu3 %v575_v33 }
  0xe4   : > { %754 = vmatpush.msrb.mxu3 %v574_v34 }
 0x160   : > { %v690_v19 = vpop.f32.mrf.mxu3 }
 0x161   : > { %694 = vst.msk [vmem:[%s560_s2] sm:$0xff] %vm693_vm1, %v690_v19  ;;  %v695_v20 = vsel %vm693_vm1, %v690_v19, -inf }
 0x162   : > { %696 = vmax.xlane.f32.xlu0 %v695_v20 }
 0x1d5   : > { %v697_v23 = vpop.xlane.xlu0 %696 }
 0x1d6   : > { %v698_v25 = vsub.f32 %v690_v19, %v697_v23 }
 0x1d8   : > { %v699_v28 = vmul.f32 1.442695, %v698_v25 }
 0x1da   : > { %1206 = vpow2.f32 %v699_v28 }
 0x1e0   : > { %v1207_v29 = vpop.eup %1206 }
 0x1e1   : > { %v701_v30 = vsel %vm693_vm1, %v1207_v29, 0.0 }
 0x1e2   : > { %702 = vadd.xlane.f32.xlu0 %v701_v30 }
 0x255   : > { %v703_v35 = vpop.xlane.xlu0 %702 }
 0x256   : > { %1208 = vrcp.f32 %v703_v35 }
 0x257   : > { %1210 = vrcp.f32 %v1525_v46 }
 0x25c   : > { %v1209_v36 = vpop.eup %1208 }
 0x25d   : > { %v705_v37 = vmul.f32 %v1209_v36, %v703_v35  ;;  %v1211_v47 = vpop.eup %1210 }
 0x25e   : > { %v763_v48 = vmul.f32 32.0, %v1211_v47  ;;  %vm767_vm2 = vweird.f32 %v1211_v47 }
 0x25f   : > { %v706_v38 = vsub.f32 2.0, %v705_v37 }
 0x260   : > { %v764_v49 = vsub.f32 1.0, %v763_v48 }
 0x261   : > { %v707_v39 = vmul.f32 %v1209_v36, %v706_v38 }
 0x262   : > { %v765_v50 = vmul.f32 %v1211_v47, %v764_v49 }
 0x263   : > { %v708_v40 = vmul.f32 %v1207_v29, %v707_v39 }
 0x264   : > { %v766_v51 = vadd.f32 %v1211_v47, %v765_v50 }
 0x265   : > { %1079 = vmatmul.msk.f32.vlgmr.msrb.gmra.mxu0 %vm693_vm1, %v708_v40  ;;  %709 = vst.msk [vmem:[%s553_s19] sm:$0xff] %vm693_vm1, %v708_v40 }
 0x266   : > { %v768_v52 = vsel %vm767_vm2, %v1211_v47, %v766_v51 }
 0x2e2   : > { %v730_v41 = vpop.f32.mrf.mxu0 }
 0x2e3   : > { %1080 = vmatmul.msk.f32.vlgmr.msrb.gmra.mxu3 %vm584_vm0, %v730_v41 }
 0x366   : > { %v756_v43 = vpop.f32.mrf.mxu3 }
 0x367   : > { %v757_v44 = vadd.f32 %v1203_v42, %v756_v43 }
 0x369   : > { %v759_v45 = vsel %vm584_vm0, %v757_v44, 0.0 }
 0x36a   : > { %760 = vadd.xlane.f32.xlu1 %v759_v45 }
 0x3dd   : > { %v761_v53 = vpop.xlane.xlu1 %760 }
 0x3de   : > { %v769_v54 = vmul.f32 %v768_v52, %v761_v53 }
 0x3e0   : > { %v770_v55 = vsub.f32 %v757_v44, %v769_v54 }
 0x3e2   : > { %v771_v56 = vmul.f32 %v770_v55, %v770_v55 }
 0x3e4   : > { %v772_v57 = vsel %vm584_vm0, %v771_v56, 0.0 }
 0x3e5   : > { %773 = vadd.xlane.f32.xlu1 %v772_v57 }
 0x3e6   : > { %1391 = shalt.err (!%p1388_p13)
}
 0x3e7   : > { %1107 = dma.vmem_to_hbm [thread:$0]  (%p1689_p4), %s837_s12, 128, %s839_s21, %s1784_s23  }
 0x3e8   : > { %s851_s27 = sshll.u32 %s560_s2, 4  ;;  %s1910_s6 = sld [smem:[#allocation33_spill]]  ;;  %s852_s27 = int_to_ptr.vmem [resolvable:$true] %s851_s27 }
 0x3ee   : > { %s849_s28 = scalar_lea.hbm %s1910_s6, %s1776_s4  ;;  %s1412_s12 = scalar_lea.hbm %s1910_s6, 16 }
 0x3ef   : > { %s853_s29 = sshll.u32 %s849_s28, 4  ;;  %s854_s29 = int_to_ptr.hbm [resolvable:$true] %s853_s29 }
 0x3f0   : > { %s1406_s11 = sshra.s32 %s854_s29, 4  ;;  %s1407_s11 = int_to_ptr.hbm [resolvable:$true] %s1406_s11 }
 0x3f1   : > { %s1408_s13 = scalar_lea.hbm %s1407_s11, 8  ;;  %p1413_p8 = scmp.lt.s32.totalorder %s1407_s11, %s1910_s6 }
 0x3f2   : > { %p1409_p0 = scmp.ne.s32.totalorder %s1407_s11, %s1408_s13  ;;  %p1414_p1 = scmp.lt.s32.totalorder %s1412_s12, %s1408_s13 }
 0x3f4   : > { %p1410_p2 = pnand %p1409_p0, %p1689_p4  ;;  %p1415_p3 = por %p1414_p1, %p1413_p8 }
 0x3f6   : > { %p1411_p5 = pneg %p1410_p2 }
 0x3f8   : > { %p1416_p9 = pnand %p1415_p3, %p1411_p5 }
 0x3fa   : > { %1419 = shalt.err (!%p1416_p9)
}
 0x3fb   : > { %1108 = dma.vmem_to_hbm [thread:$0]  (%p1689_p4), %s852_s27, 128, %s854_s29, %s1784_s23  }
 0x3fc   : > { %s1911_s15 = sld [smem:[#allocation29_spill]]  ;;  %s546_s11 = scalar_lea.vmem [#allocation11], %s1722_s10 }
 0x3fd   : > { %s1912_s27 = sld [smem:[#allocation31_spill]]  ;;  %s821_s13 = sshll.u32 %s546_s11, 4  ;;  %s822_s13 = int_to_ptr.vmem [resolvable:$true] %s821_s13 }
 0x3fe   : > { %s1913_s29 = sld [smem:[#allocation30_spill]]  ;;  %s798_s24 = scalar_lea.sflag [#allocation4], %s1719_s9 }
 0x402   : > { %v1204_v3 = vld [vmem:[%s1911_s15] ss:$0 sm:$0xff] }
 0x403   : > { %s819_s8 = scalar_lea.hbm %s1912_s27, %s1776_s4  ;;  %s1440_s10 = scalar_lea.hbm %s1912_s27, 16 }
 0x404   : > { %v1205_v6 = vld [vmem:[%s1913_s29] ss:$0 sm:$0xff]  ;;  %s823_s20 = sshll.u32 %s819_s8, 4  ;;  %s824_s20 = int_to_ptr.hbm [resolvable:$true] %s823_s20 }
 0x405   : > { %s1434_s12 = sshra.s32 %s824_s20, 4  ;;  %s1435_s12 = int_to_ptr.hbm [resolvable:$true] %s1434_s12 }
 0x406   : > { %s1436_s4 = scalar_lea.hbm %s1435_s12, 8  ;;  %p1441_p13 = scmp.lt.s32.totalorder %s1435_s12, %s1912_s27 }
 0x407   : > { %p1437_p10 = scmp.ne.s32.totalorder %s1435_s12, %s1436_s4  ;;  %p1442_p0 = scmp.lt.s32.totalorder %s1440_s10, %s1436_s4 }
 0x409   : > { %p1438_p11 = pnand %p1437_p10, %p1689_p4  ;;  %p1443_p2 = por %p1442_p0, %p1441_p13 }
 0x40b   : > { %p1439_p12 = pneg %p1438_p11 }
 0x40d   : > { %p1444_p5 = pnand %p1443_p2, %p1439_p12 }
 0x458   : > { %v774_v58 = vpop.xlane.xlu1 %773 }
 0x459   : > { %v775_v59 = vmul.f32 %v774_v58, %v768_v52 }
 0x45b   : > { %v776_v60 = vadd.f32 1e-05, %v775_v59 }
 0x45d   : > { %1212 = vrsqrt.f32 %v776_v60  ;;  %vm783_vm4 = vweird.f32 %v776_v60 }
 0x463   : > { %v1213_v61 = vpop.eup %1212 }
 0x464   : > { %v778_v62 = vmul.f32 %v1213_v61, %v776_v60  ;;  %vm784_vm3 = vweird.f32 %v1213_v61 }
 0x465   : > { %vm785_vm5 = vmor %vm783_vm4, %vm784_vm3 }
 0x466   : > { %v779_v63 = vmul.f32 %v1213_v61, %v778_v62 }
 0x468   : > { %v780_v0 = vmul.f32 0.5, %v779_v63 }
 0x46a   : > { %v781_v1 = vsub.f32 1.5, %v780_v0 }
 0x46c   : > { %v782_v2 = vmul.f32 %v1213_v61, %v781_v1 }
 0x46e   : > { %v786_v4 = vsel %vm785_vm5, %v1213_v61, %v782_v2 }
 0x46f   : > { %v787_v5 = vmul.f32 %v786_v4, %v770_v55 }
 0x471   : > { %v791_v7 = vmul.f32 %v1204_v3, %v787_v5 }
 0x473   : > { %v795_v8 = vadd.f32 %v1205_v6, %v791_v7 }
 0x475   : > { %796 = vst.msk [vmem:[%s546_s11] sm:$0xff] %vm584_vm0, %v795_v8 }
 0x476   : > { %1447 = shalt.err (!%p1444_p5)
}
 0x477   : > { %1106 = dma.vmem_to_hbm [thread:$0]  (%p1689_p4), %s822_s13, 128, %s824_s20, %s798_s24  }
 0x478 PF: > { %s1914_s9 = sld [smem:[#allocation21_spill]]  ;;  %p1130_p8 = pnand %p1056_p6, %p1697_p7 }
 0x47a   : > { %p1131_p1 = pneg %p1130_p8 }
 0x47e   : > { %s865_s23 = sand.u32 1, %s1914_s9  }
 0x47f   : > { %s866_s18 = scalar_lea.sflag [#allocation4], %s865_s23 }
 0x480   : > { %1489 = dma.done.wait (%p1131_p1), %s866_s18, 128  }
 0x481   : > { %1491 = vsyncadd (%p1131_p1), %s866_s18, 4294967168  ;;  %s1916_s8 = sadd.s32 4294967294, %s1518_s26  }
 0x482   : > { %s875_s19 = sand.u32 1, %s1916_s8  }
 0x483   : > { %s876_s28 = scalar_lea.sflag [#allocation13], %s875_s19 }
 0x484   : > { %1493 = dma.done.wait (%p1131_p1), %s876_s28, 256  }
 0x485   : > { %1495 = vsyncadd (%p1131_p1), %s876_s28, 4294967040  ;;  %s36_s26 = sadd.s32 1, %s1518_s26   ;;  %s1917_s14 = sld [smem:[#allocation22_spill]] }
 0x486   : > { %p33_p4 = scmp.ge.s32.totalorder %s36_s26, 4   ;;  %s1918_s23 = sld [smem:[#allocation24_spill]] }
 0x487   : > { %s1919_s29 = sld [smem:[#allocation23_spill]]  ;;  %s1920_s21 = smov %s1502_s22 }
 0x488   : > { %s1922_s24 = smov %s1514_s25 }
 0x489   :  { %35 = sbr.rel (!%p33_p4) target bundleno = 20 (0x14), region = 162 }
 0x48b   : > { %s1921_s22 = smov %s1917_s14 }
 0x48d   : > { %s1923_s25 = smov %s1919_s29 }
 0x48e   :  { %892 = vsyncpa [#allocation3], 1 }
 0x48f   :  { %894 = vsyncpa [#allocation3 + $0x1], 1 }
 0x490   :  { %895 = vsyncpa [#allocation6], 1 }
 0x491   :  { %897 = vsyncpa [#allocation6 + $0x1], 1 }
 0x492   :  { %898 = vsyncpa [#allocation9], 1 }
 0x493   :  { %899 = vsyncpa [#allocation4], 1 }
 0x494   :  { %901 = vsyncpa [#allocation4 + $0x1], 1 }
 0x495   :  { %902 = vsyncpa [#allocation13], 1 }
 0x496   :  { %904 = vsyncpa [#allocation13 + $0x1], 1 }

</bundles_post_ra>
